<compile_context>
chip_gen: v5e
topology: v5e:2x2
jax: 0.10.0
libtpu: 0.0.40
codegen_flags: <defaults>
</compile_context>

<pallas_src>
import math

import jax
import jax.numpy as jnp
from jax import lax
from jax.experimental import pallas as pl
from jax.experimental.pallas import tpu as pltpu


_SUBLANE = 8
_MAX_TM = 4096                       # cap on rows per grid step
_MIN_GRID_STEPS = 4                  # keep both v7x TensorCores fed
_SPLIT_BATCH_THRESHOLD = 4 * 256     # only force >=4 steps when steps stay big
_VMEM_HEADROOM = 2 * 1024 * 1024     # compiler-internal scratch headroom


def _round_up(a, b):
    return -(-a // b) * b


def _vmem_limit_bytes():
    """Generation-aware VMEM budget (~81% of physical capacity)."""
    try:
        cap = int(pltpu.get_tpu_info().vmem_capacity_bytes)
    except Exception:
        cap = 64 * 1024 * 1024       # conservative fallback (v7x physical VMEM)
    return (cap * 13) // 16          # ~104 MiB on v5e/v6e, ~52 MiB on v7x


def build_givens_weight(angles, dim):
    """Compose the dim*(dim-1)/2 Givens rotations (reference pair order:
    (0,1),(0,2),...,(0,d-1),(1,2),...) into one (dim, dim) matrix W, i.e.
    GivensLinear.weight_matrix(), so forward(x) == x @ W + bias.

    Instead of one sequential step per rotation (O(dim^2) tiny dynamic-slice
    updates), each "fan" of rotations sharing the first index i is composed in
    closed form (vectorized cumulative products of the cosines) and applied
    with one (dim, dim) MXU matmul -> only dim-1 sequential steps.

    Assumes no cos(angle) is exactly 0.0 (true for this module's small random
    angles; measure-zero in float32 otherwise).
    TODO(synk): cache W across calls when the angles are reused.
    """
    dtype = jnp.float32
    if dim < 2:
        return jnp.eye(dim, dtype=dtype)
    angles = angles.astype(dtype)
    cos_all = jnp.cos(angles)
    sin_all = jnp.sin(angles)

    # C[i, j] = cos(theta_{ij}), S[i, j] = sin(theta_{ij}) for j > i,
    # padded with identity-like values (cos=1, sin=0) elsewhere.
    ii = lax.broadcasted_iota(jnp.int32, (dim, dim), 0)
    jj = lax.broadcasted_iota(jnp.int32, (dim, dim), 1)
    upper = jj > ii
    pair_idx = ii * (dim - 1) - (ii * (ii - 1)) // 2 + (jj - ii - 1)
    pair_idx = jnp.where(upper, pair_idx, 0)
    C = jnp.where(upper, jnp.take(cos_all, pair_idx), jnp.ones((), dtype))
    S = jnp.where(upper, jnp.take(sin_all, pair_idx), jnp.zeros((), dtype))

    col = jnp.arange(dim)
    row2d = lax.broadcasted_iota(jnp.int32, (dim, dim), 0)
    col2d = lax.broadcasted_iota(jnp.int32, (dim, dim), 1)

    def body(i, M):
        # Closed form of the fan i composition acting on rows i..dim-1 of
        # M = W^T (rows of M == columns of W), preserving the reference
        # per-pair ordering within the fan (j ascending).
        c = C[i]                                   # (dim,): 1.0 for cols <= i
        s = S[i]                                   # (dim,): 0.0 for cols <= i
        p = jnp.cumprod(c)                         # p[j] = prod_{i<k<=j} cos
        pe = jnp.concatenate([jnp.ones((1,), dtype), p[:-1]])   # p[j-1]
        q = s / p                                  # sin_m / p_m  (0 for m <= i)
        r = s * pe                                 # sin_j * p_{j-1}
        p_last = p[dim - 1]

        A = jnp.zeros((dim, dim), dtype)
        A = jnp.where((row2d > i) & (col2d > i) & (col2d < row2d),
                      -r[:, None] * q[None, :], A)                # lower band
        A = jnp.where((row2d > i) & (col2d == i), r[:, None], A)  # column i
        A = jnp.where((row2d == i) & (col2d > i),
                      (-p_last * q)[None, :], A)                  # row i
        diag = jnp.where(col == i, p_last,
                         jnp.where(col > i, c, jnp.ones((), dtype)))
        A = jnp.where(row2d == col2d, diag[None, :], A)
        return jnp.dot(A, M, preferred_element_type=dtype)

    M = lax.fori_loop(0, dim - 1, body, jnp.eye(dim, dtype=dtype))
    return M.T


def _givens_linear_kernel(x_ref, w_ref, b_ref, o_ref):
    # x_ref: (TM, D)   w_ref: (D, D)   b_ref: (1, D)   o_ref: (TM, D)
    acc = jnp.dot(x_ref[...], w_ref[...], preferred_element_type=jnp.float32)
    o_ref[...] = (acc + b_ref[...]).astype(o_ref.dtype)


def _choose_tm(batch, dim, x_itemsize, out_itemsize, w_itemsize, vmem_limit):
    """Largest batch tile (multiple of 8) whose double-buffered x/out tiles
    plus the VMEM-resident W/bias fit the generation-aware VMEM budget."""
    if batch < _SUBLANE:
        return batch                              # tiny batch: one full block
    # W + bias are requested single-buffered, but budget them double-buffered
    # so a compiler that ignores pl.Buffered(1) still fits.
    resident = 2 * (dim * dim * w_itemsize + dim * 4)
    per_row = 2 * dim * (x_itemsize + out_itemsize)   # double-buffered x / out
    avail = max(vmem_limit - resident - _VMEM_HEADROOM, per_row * _SUBLANE)
    tm = min(avail // per_row, _MAX_TM)
    if batch >= _SPLIT_BATCH_THRESHOLD:
        # Keep >= _MIN_GRID_STEPS grid steps so v7x's 2 TensorCores both work.
        tm = min(tm, _round_up(-(-batch // _MIN_GRID_STEPS), _SUBLANE))
    tm = max(_SUBLANE, (tm // _SUBLANE) * _SUBLANE)
    return min(tm, _round_up(batch, _SUBLANE))


def givens_linear_forward(x, angles, bias=None, use_bf16_matmul=False):
    """x: (..., dim) -> (..., dim); matches GivensLinear.forward."""
    dim = x.shape[-1]
    lead_shape = x.shape[:-1]
    batch = math.prod(lead_shape) if lead_shape else 1
    out_dtype = x.dtype

    # --- weight / bias setup (plain JAX glue) -------------------------------
    w = build_givens_weight(angles, dim)
    if bias is None:
        b2d = jnp.zeros((1, dim), jnp.float32)
    else:
        b2d = bias.astype(jnp.float32).reshape(1, dim)

    x2d = x.reshape(batch, dim)                   # free reshape, no HBM pass
    if use_bf16_matmul:
        # v6e/v7x MXU is bf16-native and x/W HBM bytes halve; accumulation and
        # the bias add stay f32 in-kernel.  NOTE: if x arrives as f32 this cast
        # is a separate XLA pass -- prefer feeding bf16 activations.  Off by
        # default so the 1e-5 check in __main__ holds.
        x2d = x2d.astype(jnp.bfloat16)
        w = w.astype(jnp.bfloat16)

    vmem_limit = _vmem_limit_bytes()
    tm = _choose_tm(batch, dim, x2d.dtype.itemsize,
                    jnp.dtype(out_dtype).itemsize, w.dtype.itemsize, vmem_limit)
    grid = (pl.cdiv(batch, tm),)                  # ragged last block: OOB rows
                                                  # read garbage, writes masked;
                                                  # rows are independent.

    cost = pl.CostEstimate(
        flops=2 * batch * dim * dim,
        transcendentals=0,
        bytes_accessed=(x2d.size * x2d.dtype.itemsize
                        + w.size * w.dtype.itemsize
                        + b2d.size * 4
                        + batch * dim * jnp.dtype(out_dtype).itemsize),
    )

    out2d = pl.pallas_call(
        _givens_linear_kernel,
        out_shape=jax.ShapeDtypeStruct((batch, dim), out_dtype),
        grid_spec=pltpu.PrefetchScalarGridSpec(
            num_scalar_prefetch=0,
            grid=grid,
            in_specs=[
                pl.BlockSpec((tm, dim), lambda i: (i, 0)),
                # W and bias: same block every step -> VMEM-resident; a single
                # buffer suffices (there is no "next" block to prefetch).
                pl.BlockSpec((dim, dim), lambda i: (0, 0),
                             pipeline_mode=pl.Buffered(1)),
                pl.BlockSpec((1, dim), lambda i: (0, 0),
                             pipeline_mode=pl.Buffered(1)),
            ],
            out_specs=pl.BlockSpec((tm, dim), lambda i: (i, 0)),
        ),
        compiler_params=pltpu.CompilerParams(
            dimension_semantics=("parallel",),
            vmem_limit_bytes=vmem_limit,
        ),
        cost_estimate=cost,
    )(x2d, w, b2d)

    # TODO(synk): for dim large enough that W (dim^2 f32) no longer fits VMEM
    # (>= ~3K on v7x, ~4K on v5e/v6e), switch to an N/K-tiled grid with a VMEM
    # f32 accumulator (init at k==0, writeback at k==last, K axis "arbitrary").
    return out2d.reshape(lead_shape + (dim,))


def reference_forward(x, angles, bias, pairs):
    """Pure-JAX replica of the PyTorch per-pair update loop (for checking)."""
    out = x.astype(jnp.float32)
    cos_vals = jnp.cos(angles)
    sin_vals = jnp.sin(angles)
    for idx, (i, j) in enumerate(pairs):
        xi = out[..., i]
        xj = out[..., j]
        new_i = cos_vals[idx] * xi - sin_vals[idx] * xj
        new_j = sin_vals[idx] * xi + cos_vals[idx] * xj
        out = out.at[..., i].set(new_i)
        out = out.at[..., j].set(new_j)
    return out + bias


if __name__ == "__main__":
    dim = 8
    batch, seq = 2, 16

    pairs = [(i, j) for i in range(dim) for j in range(i + 1, dim)]
    n_pairs = len(pairs)

    key = jax.random.PRNGKey(0)
    k_x, k_a, k_b = jax.random.split(key, 3)
    x = jax.random.normal(k_x, (batch, seq, dim), dtype=jnp.float32)
    angles = jax.random.normal(k_a, (n_pairs,), dtype=jnp.float32) * 0.01
    bias = jax.random.normal(k_b, (dim,), dtype=jnp.float32) * 0.1

    fwd = jax.jit(givens_linear_forward)
    out = jax.block_until_ready(fwd(x, angles, bias))

    ref = reference_forward(x, angles, bias, pairs)
    assert out.shape == ref.shape == (batch, seq, dim)
    max_err = float(jnp.max(jnp.abs(out - ref)))
    assert jnp.allclose(out, ref, atol=1e-5, rtol=1e-5), max_err

    print("KERNEL_OK")
</pallas_src>

<mosaic_0001>
module attributes {stable_mosaic.version = 11 : i64} {
  func.func @_givens_linear_kernel(%arg0: i32, %arg1: memref<32x8xf32, #tpu.memory_space<vmem>>, %arg2: memref<8x8xf32, #tpu.memory_space<vmem>>, %arg3: memref<1x8xf32, #tpu.memory_space<vmem>>, %arg4: memref<32x8xf32, #tpu.memory_space<vmem>>) attributes {dimension_semantics = [#tpu.dimension_semantics<parallel>], iteration_bounds = array<i64: 1>, scalar_prefetch = 0 : i64, scratch_operands = 0 : i64, tpu.core_type = #tpu.core_type<tc>, window_params = [{transform_indices = @transform_0, window_bounds = array<i64: 32, 8>}, {pipeline_mode = #tpu.pipeline_mode<synchronous>, transform_indices = @transform_1, window_bounds = array<i64: 8, 8>}, {pipeline_mode = #tpu.pipeline_mode<synchronous>, transform_indices = @transform_2, window_bounds = array<i64: 1, 8>}, {transform_indices = @transform_3, window_bounds = array<i64: 32, 8>}]} {
    %c0 = arith.constant 0 : index
    %c0_0 = arith.constant 0 : index
    %0 = vector.load %arg1[%c0, %c0_0] : memref<32x8xf32, #tpu.memory_space<vmem>>, vector<32x8xf32>
    %c0_1 = arith.constant 0 : index
    %c0_2 = arith.constant 0 : index
    %1 = vector.load %arg2[%c0_1, %c0_2] : memref<8x8xf32, #tpu.memory_space<vmem>>, vector<8x8xf32>
    %cst = arith.constant dense<0.000000e+00> : vector<32x8xf32>
    %2 = tpu.matmul %0, %1, %cst {dimension_numbers = #tpu.dot_dimension_numbers<[1], [0], [0], [1], [0, 0, 1, 1], [], []>} : vector<32x8xf32>, vector<8x8xf32>, vector<32x8xf32> -> vector<32x8xf32>
    %c0_3 = arith.constant 0 : index
    %c0_4 = arith.constant 0 : index
    %3 = vector.load %arg3[%c0_3, %c0_4] : memref<1x8xf32, #tpu.memory_space<vmem>>, vector<1x8xf32>
    %4 = vector.broadcast %3 : vector<1x8xf32> to vector<32x8xf32>
    %5 = arith.addf %2, %4 : vector<32x8xf32>
    %c0_5 = arith.constant 0 : index
    %c0_6 = arith.constant 0 : index
    %6 = vector.load %arg4[%c0_5, %c0_6] : memref<32x8xf32, #tpu.memory_space<vmem>>, vector<32x8xf32>
    tpu.vector_store %arg4[%c0_5, %c0_6], %5 {strides = array<i32>} : memref<32x8xf32, #tpu.memory_space<vmem>>, vector<32x8xf32>,
    return
  }
  func.func @transform_0(%arg0: i32) -> (i32, i32) {
    %c0_i32 = arith.constant 0 : i32
    %c0_i32_0 = arith.constant 0 : i32
    return %arg0, %c0_i32 : i32, i32
  }
  func.func @transform_1(%arg0: i32) -> (i32, i32) {
    %c0_i32 = arith.constant 0 : i32
    %c0_i32_0 = arith.constant 0 : i32
    %c0_i32_1 = arith.constant 0 : i32
    return %c0_i32, %c0_i32_0 : i32, i32
  }
  func.func @transform_2(%arg0: i32) -> (i32, i32) {
    %c0_i32 = arith.constant 0 : i32
    %c0_i32_0 = arith.constant 0 : i32
    %c0_i32_1 = arith.constant 0 : i32
    return %c0_i32, %c0_i32_0 : i32, i32
  }
  func.func @transform_3(%arg0: i32) -> (i32, i32) {
    %c0_i32 = arith.constant 0 : i32
    %c0_i32_0 = arith.constant 0 : i32
    return %arg0, %c0_i32 : i32, i32
  }
}

</mosaic_0001>

<bundles_post_ra>
// kernel: givens_linear_forward.1
= control target key start
LH: loop header
LB: loop body
LE: loop exit
PB: predicated region body
PF: predicated region fallthrough
CT: control target
= control target key end

     0   :  { %vm23_vm0 = vcmask 64512   ;;  %s139_s1 = inlined_call_operand.vmem [shape: f32[8,8], index: 1, kind: input, shape index: {}]   ;;  %s140_s0 = inlined_call_operand.vmem [shape: f32[32,8], index: 0, kind: input, shape index: {}]   ;;  %s141_s2 = inlined_call_operand.vmem [shape: f32[1,8], index: 2, kind: input, shape index: {}]   ;;  %s142_s3 = inlined_call_operand.vmem [shape: f32[32,8], index: 3, kind: output, shape index: {}]  }
   0x1   :  { %v18_v0 = vld [vmem:[%s139_s1] sm:$0xff]  ;;  %v16_v1 = vld [vmem:[%s140_s0 + $0x10] sm:$0xff]  ;;  %v17_v2 = vld [vmem:[%s140_s0 + $0x18] sm:$0xff] }
   0x2   :  { %78 = vmatpush.msra.mxu2 %v18_v0  ;;  %79 = vmatpush.msra.mxu3 %v18_v0  ;;  %v14_v3 = vld [vmem:[%s140_s0] sm:$0xff]  ;;  %v15_v4 = vld [vmem:[%s140_s0 + $0x8] sm:$0xff] }
   0x3   :  { %75 = vmatmul.msk.f32.vlgmr.msra.gmra.mxu2 %vm23_vm0, %v16_v1  ;;  %76 = vmatmul.msk.f32.vlgmr.msra.gmra.mxu3 %vm23_vm0, %v17_v2  ;;  %v80_v5 = vld [vmem:[%s141_s2] ss:$0 sm:$0xff] }
   0x4   :  { %51 = vmatpush.msra.mxu0 %v18_v0  ;;  %77 = vmatpush.msra.mxu1 %v18_v0 }
   0x5   :  { %73 = vmatmul.msk.f32.vlgmr.msra.gmra.mxu0 %vm23_vm0, %v14_v3  ;;  %74 = vmatmul.msk.f32.vlgmr.msra.gmra.mxu1 %vm23_vm0, %v15_v4 }
  0x82   :  { %v53_v6 = vpop.f32.mrf.mxu0  ;;  %v56_v7 = vpop.f32.mrf.mxu1 }
  0x83   :  { %v54_v8 = vadd.f32 %v80_v5, %v53_v6  ;;  %v57_v9 = vadd.f32 %v80_v5, %v56_v7 }
  0x85   :  { %65 = vst.msk [vmem:[%s142_s3] sm:$0xff] %vm23_vm0, %v54_v8 }
  0x86   :  { %66 = vst.msk [vmem:[%s142_s3 + $0x8] sm:$0xff] %vm23_vm0, %v57_v9  ;;  %v59_v10 = vpop.f32.mrf.mxu2  ;;  %v62_v11 = vpop.f32.mrf.mxu3 }
  0x87   :  { %v60_v12 = vadd.f32 %v80_v5, %v59_v10  ;;  %v63_v13 = vadd.f32 %v80_v5, %v62_v11 }
  0x89   :  { %67 = vst.msk [vmem:[%s142_s3 + $0x10] sm:$0xff] %vm23_vm0, %v60_v12 }
  0x8a   :  { %68 = vst.msk [vmem:[%s142_s3 + $0x18] sm:$0xff] %vm23_vm0, %v63_v13 }

</bundles_post_ra>
